<compile_context>
chip_gen: v7x
topology: tpu7x:2x2x1
jax: 0.10.0
libtpu: 0.0.40
codegen_flags: <defaults>
</compile_context>

<pallas_src>
import functools

import jax
import jax.numpy as jnp
from jax.experimental import pallas as pl
from jax.experimental.pallas import tpu as pltpu

_LANE = 128


def _smooth_l1(x_abs, beta: float, dtype):
    """Smooth-L1 of |pred - target|; beta constants folded at trace time."""
    if beta > 0.0:
        half_beta = jnp.asarray(0.5 * beta, dtype)
        inv_2beta = jnp.asarray(0.5 / beta, dtype)
        return jnp.where(x_abs >= jnp.asarray(beta, dtype),
                         x_abs - half_beta,
                         x_abs * x_abs * inv_2beta)
    # beta == 0: where(x >= 0, x - 0, ...) == pure L1, matching the PyTorch module.
    return x_abs


def _smooth_l1_kernel(pred_ref, target_ref, out_ref, *, beta: float):
    # NOTE: the partial last grid block may read OOB/garbage lanes; that is safe only
    # because this is a pure elementwise map whose OOB output writeback is masked.
    # Any future in-kernel reduction must mask the tail explicitly.
    x = jnp.abs(pred_ref[...] - target_ref[...])
    out_ref[...] = _smooth_l1(x, beta, x.dtype)


def _round_up(a: int, b: int) -> int:
    return ((a + b - 1) // b) * b


def _round_down(a: int, b: int) -> int:
    return (a // b) * b


def smooth_l1_loss(pred: jax.Array, target: jax.Array, beta: float = 0.11,
                   *, min_pallas_elems: int = 1 << 20) -> jax.Array:
    assert pred.shape == target.shape and pred.dtype == target.dtype
    orig_shape = pred.shape
    dtype = pred.dtype
    n = pred.size
    beta = float(beta)

    itemsize = jnp.dtype(dtype).itemsize
    # Sublane multiple accounting for sub-32-bit packing (f32: 8, bf16: 16, int8/fp8: 32).
    sub = 8 * max(1, 4 // itemsize)
    chunk = _LANE * sub

    n_main = _round_down(n, chunk)

    # Small-input fast path: kernel launch + per-step overhead dominates tiny inputs and
    # XLA's fused elementwise is already optimal there.
    if n < min_pallas_elems or n_main == 0:
        return _smooth_l1(jnp.abs(pred - target), beta, dtype)

    pred_flat = pred.reshape(-1)
    target_flat = target.reshape(-1)

    rows = n_main // _LANE
    if n_main == n:
        # Aligned (typical SSD shapes): pure metadata reshape, zero extra HBM traffic.
        pred2 = pred_flat.reshape(rows, _LANE)
        target2 = target_flat.reshape(rows, _LANE)
    else:
        # Aligned prefix only; the ragged tail (< chunk elements) is handled with jnp
        # below instead of padding both inputs and slicing the output (saves ~2-3x HBM
        # traffic on unaligned shapes).
        pred2 = pred_flat[:n_main].reshape(rows, _LANE)
        target2 = target_flat[:n_main].reshape(rows, _LANE)

    # ~2 MiB per-operand block: near the HBM roofline on v5e/v6e/v7x while
    # 3 operands x 2 pipeline buffers stays well under v7x's 64 MiB physical VMEM.
    target_block_bytes = 2 * 1024 * 1024
    tile_rows = max(sub, min(rows, target_block_bytes // (_LANE * itemsize)))
    tile_rows = _round_up(tile_rows, sub)

    # Guarantee >= 4 grid steps when the input would otherwise fit in 1-2 tiles so each
    # v7x TensorCore gets >= 2 pipelined (double-buffered) steps; harmless on v5e/v6e.
    desired_steps = 4
    if pl.cdiv(rows, tile_rows) < desired_steps:
        tile_rows = max(sub, ((rows // desired_steps) // sub) * sub)

    grid = (pl.cdiv(rows, tile_rows),)  # masked partial last block; never shrink the tile

    kernel = functools.partial(_smooth_l1_kernel, beta=beta)

    out2 = pl.pallas_call(
        kernel,
        out_shape=jax.ShapeDtypeStruct((rows, _LANE), dtype),
        grid_spec=pltpu.PrefetchScalarGridSpec(
            num_scalar_prefetch=0,
            grid=grid,
            in_specs=[
                pl.BlockSpec((tile_rows, _LANE), lambda i: (i, 0)),
                pl.BlockSpec((tile_rows, _LANE), lambda i: (i, 0)),
            ],
            out_specs=pl.BlockSpec((tile_rows, _LANE), lambda i: (i, 0)),
        ),
        compiler_params=pltpu.CompilerParams(
            dimension_semantics=("parallel",),
            # Explicit limit: escapes v5e's 16 MiB scoped default; 32 MiB keeps headroom
            # and is safe on every generation (v5e/v6e: 128 MiB physical, v7x: 64 MiB).
            vmem_limit_bytes=32 * 1024 * 1024,
        ),
    )(pred2, target2)

    out_main = out2.reshape(-1)
    if n_main == n:
        return out_main.reshape(orig_shape)

    # Ragged tail (< chunk elements): plain jnp, stitched onto the kernel output.
    tail = _smooth_l1(jnp.abs(pred_flat[n_main:] - target_flat[n_main:]), beta, dtype)
    return jnp.concatenate([out_main, tail]).reshape(orig_shape)
    # TODO(synk): if a downstream sum/mean reduction is added, fuse it in-kernel to drop
    # the output HBM stream entirely (reduction='none' here, so not applicable).


def _reference(pred, target, beta=0.11):
    x = jnp.abs(pred - target)
    l1 = x - 0.5 * beta
    if beta == 0.0:
        return x
    l2 = 0.5 * x * x / beta
    return jnp.where(x >= beta, l1, l2)


if __name__ == "__main__":
    key = jax.random.PRNGKey(0)
    k1, k2 = jax.random.split(key)
    # Small NCHW-style shapes consistent with box-regression predictions.
    pred = jax.random.normal(k1, (2, 4, 16, 16), dtype=jnp.float32)
    target = jax.random.normal(k2, (2, 4, 16, 16), dtype=jnp.float32)
    ref = _reference(pred, target, beta=0.11)

    # Force the Pallas path (shape is below the small-input threshold) to exercise it.
    out = jax.block_until_ready(smooth_l1_loss(pred, target, beta=0.11,
                                               min_pallas_elems=0))
    assert out.shape == ref.shape
    assert jnp.allclose(out, ref, atol=1e-6, rtol=1e-6)

    # Default wrapper (small-input fast path) must match too.
    out_fast = jax.block_until_ready(smooth_l1_loss(pred, target, beta=0.11))
    assert jnp.allclose(out_fast, ref, atol=1e-6, rtol=1e-6)

    # Non-aligned size: exercises the aligned-prefix kernel + jnp tail stitch path.
    k3, k4 = jax.random.split(k1)
    pred_odd = jax.random.normal(k3, (3, 4, 13, 7), dtype=jnp.float32)
    target_odd = jax.random.normal(k4, (3, 4, 13, 7), dtype=jnp.float32)
    out_odd = jax.block_until_ready(smooth_l1_loss(pred_odd, target_odd, beta=0.11,
                                                   min_pallas_elems=0))
    assert jnp.allclose(out_odd, _reference(pred_odd, target_odd, beta=0.11),
                        atol=1e-6, rtol=1e-6)

    print("KERNEL_OK")
</pallas_src>

<mosaic_0001>
module attributes {stable_mosaic.version = 11 : i64} {
  func.func @_smooth_l1_kernel(%arg0: i32, %arg1: memref<8x128xf32, #tpu.memory_space<vmem>>, %arg2: memref<8x128xf32, #tpu.memory_space<vmem>>, %arg3: memref<8x128xf32, #tpu.memory_space<vmem>>) attributes {dimension_semantics = [#tpu.dimension_semantics<parallel>], iteration_bounds = array<i64: 2>, scalar_prefetch = 0 : i64, scratch_operands = 0 : i64, tpu.core_type = #tpu.core_type<tc>, window_params = [{transform_indices = @transform_0, window_bounds = array<i64: 8, 128>}, {transform_indices = @transform_1, window_bounds = array<i64: 8, 128>}, {transform_indices = @transform_2, window_bounds = array<i64: 8, 128>}]} {
    %c0 = arith.constant 0 : index
    %c0_0 = arith.constant 0 : index
    %0 = vector.load %arg1[%c0, %c0_0] : memref<8x128xf32, #tpu.memory_space<vmem>>, vector<8x128xf32>
    %c0_1 = arith.constant 0 : index
    %c0_2 = arith.constant 0 : index
    %1 = vector.load %arg2[%c0_1, %c0_2] : memref<8x128xf32, #tpu.memory_space<vmem>>, vector<8x128xf32>
    %2 = arith.subf %0, %1 : vector<8x128xf32>
    %3 = math.absf %2 : vector<8x128xf32>
    %cst = arith.constant 1.100000e-01 : f32
    %4 = vector.broadcast %cst : f32 to vector<8x128xf32>
    %5 = arith.cmpf oge, %3, %4 : vector<8x128xf32>
    %cst_3 = arith.constant 5.500000e-02 : f32
    %6 = vector.broadcast %cst_3 : f32 to vector<8x128xf32>
    %7 = arith.subf %3, %6 : vector<8x128xf32>
    %8 = arith.mulf %3, %3 : vector<8x128xf32>
    %cst_4 = arith.constant 4.5454545 : f32
    %9 = vector.broadcast %cst_4 : f32 to vector<8x128xf32>
    %10 = arith.mulf %8, %9 : vector<8x128xf32>
    %11 = arith.select %5, %7, %10 : vector<8x128xi1>, vector<8x128xf32>
    %c0_5 = arith.constant 0 : index
    %c0_6 = arith.constant 0 : index
    %12 = vector.load %arg3[%c0_5, %c0_6] : memref<8x128xf32, #tpu.memory_space<vmem>>, vector<8x128xf32>
    tpu.vector_store %arg3[%c0_5, %c0_6], %11 {strides = array<i32>} : memref<8x128xf32, #tpu.memory_space<vmem>>, vector<8x128xf32>,
    return
  }
  func.func @transform_0(%arg0: i32) -> (i32, i32) {
    %c0_i32 = arith.constant 0 : i32
    %c0_i32_0 = arith.constant 0 : i32
    return %arg0, %c0_i32 : i32, i32
  }
  func.func @transform_1(%arg0: i32) -> (i32, i32) {
    %c0_i32 = arith.constant 0 : i32
    %c0_i32_0 = arith.constant 0 : i32
    return %arg0, %c0_i32 : i32, i32
  }
  func.func @transform_2(%arg0: i32) -> (i32, i32) {
    %c0_i32 = arith.constant 0 : i32
    %c0_i32_0 = arith.constant 0 : i32
    return %arg0, %c0_i32 : i32, i32
  }
}

</mosaic_0001>

<bundles_post_ra>
// kernel: tpu_custom_call.1
= control target key start
LH: loop header
LB: loop body
LE: loop exit
PB: predicated region body
PF: predicated region fallthrough
CT: control target
= control target key end

     0   :  { %7 = vsyncpa [#allocation3], 0  ;;  %s739_s0 = inlined_call_operand.hbm [shape: f32[16,128], index: 0, kind: input, shape index: {}]   ;;  %s740_s1 = inlined_call_operand.hbm [shape: f32[16,128], index: 1, kind: input, shape index: {}]   ;;  %s741_s2 = inlined_call_operand.hbm [shape: f32[16,128], index: 2, kind: output, shape index: {}]  }
   0x1   :  { %9 = vsyncpa [#allocation3 + $0x1], 0 }
   0x2   :  { %10 = vsyncpa [#allocation6], 0 }
   0x3   :  { %12 = vsyncpa [#allocation6 + $0x1], 0 }
   0x4   :  { %13 = vsyncpa [#allocation4], 0 }
   0x5   :  { %15 = vsyncpa [#allocation4 + $0x1], 0  ;;  %s530_s9 = smov 0   ;;  %s532_s10 = smov 0  }
   0x6   :  { %s534_s11 = smov 0   ;;  %s536_s12 = smov 0  }
   0x7 LB: > { %s551_s13 = sadd.s32 4294967295, %s510_s12   ;;  %s313_s14 = sadd.s32 4294967294, %s510_s12   ;;  %s510_s12 = sphi %s536_s12, %s760_s12   ;;  %s506_s11 = sphi %s534_s11, %s759_s11   ;;  %s502_s10 = sphi %s532_s10, %s758_s10   ;;  %s498_s9 = sphi %s530_s9, %s757_s9  }
   0x8   : > { %s555_s15 = sadd.s32 1, %s510_s12   ;;  %s28_s16 = sadd.s32 1, %s506_s11 }
   0x9   : > { %s25_s17 = ssub.s32 %s510_s12, %s555_s15  ;;  %p35_p0 = scmp.ne.s32.totalorder %s506_s11, %s502_s10 }
   0xa   : > { %p26_p1 = scmp.eq.s32.totalorder %s25_s17, 0  ;;  %p36_p2 = scmp.eq.s32.totalorder %s510_s12, 0 }
   0xb   : > { %p41_p3 = scmp.ne.s32.totalorder %s502_s10, %s498_s9  ;;  %p42_p4 = scmp.eq.s32.totalorder %s551_s13, 0 }
   0xc   : > { %s567_s18 = scalar_select %p26_p1, %s506_s11, %s28_s16  }
   0xd   : > { %p569_p5 = por %p36_p2, %p35_p0  ;;  %p573_p6 = por %p42_p4, %p41_p3 }
   0xe   : > { %p91_p7 = scmp.eq.s32.totalorder %s551_s13, 1  ;;  %p97_p8 = scmp.eq.s32.totalorder %s313_s14, 1 }
   0xf   : > { %s745_s20 = scalar_select %p573_p6, 1, 0 }
  0x10   : > { %p346_p10 = scmp.lt.s32.totalorder %s510_s12, 2  ;;  %p580_p11 = por %p91_p7, %p35_p0 }
  0x11   : > { %p584_p12 = por %p97_p8, %p41_p3  ;;  %s589_s23 = sand.u32 1, %s506_s11  }
  0x12   : > { %s746_s21 = scalar_select %p580_p11, 1, 0 }
  0x13   : > { %s747_s22 = scalar_select %p584_p12, 1, 0 }
  0x14   : > { %s317_s24 = sshll.u32 %s510_s12, 7  ;;  %s316_s25 = sshll.u32 %s589_s23, 3 }
  0x15   : > { %s598_s28 = scalar_lea.hbm %s739_s0, %s317_s24  ;;  %s121_s29 = scalar_lea.vmem [#allocation2], %s316_s25 }
  0x16   : > { %s128_s30 = sshll.u32 %s121_s29, 4  ;;  %p604_p13 = pnand %p346_p10, %p569_p5  ;;  %s608_s30 = int_to_ptr.vmem [resolvable:$true] %s128_s30 }
  0x17   : > { %s118_s4 = scalar_lea.sflag [#allocation3], %s589_s23  ;;  %s380_s5 = scalar_lea.hbm %s598_s28, 128 }
  0x18   : > { %p381_p2 = scmp.ne.s32.totalorder %s598_s28, %s380_s5  ;;  %p382_p3 = pneg %p604_p13 }
  0x19   : > { %s385_s8 = scalar_lea.hbm %s739_s0, 256  ;;  %p386_p5 = scmp.lt.u32.totalorder %s598_s28, %s739_s0 }
  0x1a   : > { %p383_p4 = pnand %p382_p3, %p381_p2  ;;  %p387_p8 = scmp.lt.u32.totalorder %s385_s8, %s380_s5 }
  0x1b   : > { %p389_p9 = scmp.lt.u32.totalorder %s380_s5, %s598_s28 }
  0x1c   : > { %p384_p7 = pneg %p383_p4  ;;  %p388_p10 = por %p387_p8, %p386_p5 }
  0x1e   : > { %p390_p0 = por %p389_p9, %p388_p10 }
  0x20   : > { %p391_p1 = pnand %p390_p0, %p384_p7 }
  0x22   : > { %394 = shalt.err (!%p391_p1)
}
  0x23   : > { %s395_s17 = scalar_lea.vmem %s608_s30, 128  ;;  %s512_s19 = smov [#allocation2]  }
  0x24   : > { %p396_p2 = scmp.ne.s32.totalorder %s608_s30, %s395_s17  ;;  %s400_s26 = sshll.u32 %s512_s19, 4  ;;  %s401_s26 = int_to_ptr.vmem [resolvable:$false] %s400_s26 }
  0x25   : > { %s402_s27 = scalar_lea.vmem %s401_s26, 256  ;;  %p403_p11 = scmp.lt.s32.totalorder %s608_s30, %s401_s26 }
  0x26   : > { %p398_p4 = pnand %p396_p2, %p382_p3  ;;  %p404_p5 = scmp.lt.s32.totalorder %s402_s27, %s395_s17 }
  0x28   : > { %p399_p12 = pneg %p398_p4  ;;  %p405_p8 = por %p404_p5, %p403_p11 }
  0x2a   : > { %p406_p9 = pnand %p405_p8, %p399_p12 }
  0x2c   : > { %409 = shalt.err (!%p406_p9)
}
  0x2d   : > { %338 = dma.hbm_to_vmem [thread:$0]  (!%p604_p13), %s598_s28, 128, %s608_s30, %s118_s4  }
  0x2e   : > { %p749_p0 = scmp.lt.s32.totalorder %s510_s12, 3  ;;  %p750_p1 = scmp.ge.s32.totalorder %s510_s12, 1 }
  0x2f   : > { %s651_s7 = scalar_lea.hbm %s740_s1, %s317_s24  ;;  %s139_s8 = scalar_lea.vmem [#allocation5], %s316_s25 }
  0x30   : > { %p642_p7 = pnand %p750_p1, %p749_p0  ;;  %s146_s14 = sshll.u32 %s139_s8, 4  ;;  %s147_s14 = int_to_ptr.vmem [resolvable:$true] %s146_s14 }
  0x31   : > { %s136_s28 = scalar_lea.sflag [#allocation6], %s589_s23  ;;  %s410_s30 = scalar_lea.hbm %s651_s7, 128 }
  0x32   : > { %s751_s29 = scalar_select %p642_p7, 1, 0 }
  0x33   : > { %p411_p11 = scmp.ne.s32.totalorder %s651_s7, %s410_s30  ;;  %s415_s24 = scalar_lea.hbm %s740_s1, 256 }
  0x34   : > { %p416_p2 = scmp.lt.u32.totalorder %s651_s7, %s740_s1  ;;  %p417_p4 = scmp.lt.u32.totalorder %s415_s24, %s410_s30 }
  0x35   : > { %p413_p12 = pnand %p411_p11, %p382_p3  ;;  %p419_p8 = scmp.lt.u32.totalorder %s410_s30, %s651_s7 }
  0x36   : > { %p418_p5 = por %p417_p4, %p416_p2 }
  0x37   : > { %p414_p10 = pneg %p413_p12 }
  0x38   : > { %p420_p9 = por %p419_p8, %p418_p5 }
  0x3a   : > { %p421_p0 = pnand %p420_p9, %p414_p10 }
  0x3c   : > { %424 = shalt.err (!%p421_p0)
}
  0x3d   : > { %s425_s23 = scalar_lea.vmem %s147_s14, 128  ;;  %s513_s25 = smov [#allocation5]  }
  0x3e   : > { %p426_p1 = scmp.ne.s32.totalorder %s147_s14, %s425_s23  ;;  %s430_s26 = sshll.u32 %s513_s25, 4  ;;  %s431_s26 = int_to_ptr.vmem [resolvable:$false] %s430_s26 }
  0x3f   : > { %s432_s27 = scalar_lea.vmem %s431_s26, 256  ;;  %p433_p6 = scmp.lt.s32.totalorder %s147_s14, %s431_s26 }
  0x40   : > { %p428_p11 = pnand %p426_p1, %p382_p3  ;;  %p434_p7 = scmp.lt.s32.totalorder %s432_s27, %s425_s23 }
  0x42   : > { %p429_p12 = pneg %p428_p11  ;;  %p435_p2 = por %p434_p7, %p433_p6 }
  0x44   : > { %p436_p4 = pnand %p435_p2, %p429_p12 }
  0x46   : > { %439 = shalt.err (!%p436_p4)
}
  0x47   : > { %341 = dma.hbm_to_vmem [thread:$0]  (!%p604_p13), %s651_s7, 128, %s147_s14, %s136_s28  }
  0x48   : > { %p752_p10 = scmp.ne.s32.totalorder %s751_s29, 0 }
  0x49   : > { %s678_s5 = sand.u32 (!%p752_p10), 1, %s502_s10   ;;  %p753_p3 = scmp.ne.s32.totalorder (!%p752_p10), %s745_s20, 0 }
  0x4a   : > { %155 = sbr.rel (%p752_p10) target bundleno = 110 (0x6e), region = 28  ;;  %s321_s6 = sshll.u32 (!%p752_p10), %s678_s5, 3 }
  0x4b   : > { %s158_s8 = scalar_lea.sflag (!%p752_p10), [#allocation3], %s678_s5  ;;  %s161_s30 = scalar_lea.vmem (!%p752_p10), [#allocation2], %s321_s6 }
  0x51   : > { %485 = dma.done.wait (%p753_p3), %s158_s8, 128  }
  0x52   : > { %487 = vsyncadd (%p753_p3), %s158_s8, 4294967168  ;;  %s167_s3 = scalar_lea.sflag [#allocation6], %s678_s5  ;;  %s170_s7 = scalar_lea.vmem [#allocation5], %s321_s6 }
  0x53   : > { %489 = dma.done.wait (%p753_p3), %s167_s3, 128  }
  0x54   : > { %491 = vsyncadd (%p753_p3), %s167_s3, 4294967168  ;;  %v196_v0 = vld [vmem:[%s161_s30] sm:$0xff]  ;;  %v197_v1 = vld [vmem:[%s170_s7] sm:$0xff]  ;;  %s195_s29 = scalar_lea.vmem [#allocation7], %s321_s6  ;;  %s326_s28 = sshll.u32 %s551_s13, 7 }
  0x55   : > { %v198_v2 = vsub.f32 %v196_v0, %v197_v1  ;;  %s220_s14 = sshll.u32 %s195_s29, 4  ;;  %s697_s20 = scalar_lea.hbm %s741_s2, %s326_s28  ;;  %s692_s14 = int_to_ptr.vmem [resolvable:$true] %s220_s14 }
  0x56   : > { %s207_s24 = scalar_lea.sflag [#allocation4], %s678_s5  ;;  %s440_s17 = scalar_lea.vmem %s692_s14, 128 }
  0x57   : > { %v199_v3 = vand.u32 2147483647, %v198_v2  ;;  %p441_p6 = scmp.ne.s32.totalorder %s692_s14, %s440_s17  ;;  %p754_p13 = scmp.ne.s32.totalorder %s746_s21, 0 }
  0x58   : > { %s514_s13 = smov [#allocation7]  }
  0x59   : > { %v324_v4 = vadd.f32 -0.055, %v199_v3  ;;  %v202_v5 = vmul.f32 %v199_v3, %v199_v3  ;;  %vm200_vm0 = vcmp.ge.f32.partialorder %v199_v3, 0.11  ;;  %p442_p7 = pnand %p441_p6, %p754_p13  ;;  %s444_s19 = sshll.u32 %s514_s13, 4  ;;  %s445_s19 = int_to_ptr.vmem [resolvable:$false] %s444_s19 }
  0x5a   : > { %s446_s23 = scalar_lea.vmem %s445_s19, 256  ;;  %p447_p8 = scmp.lt.s32.totalorder %s692_s14, %s445_s19 }
  0x5b   : > { %v203_v6 = vmul.f32 4.5454545, %v202_v5  ;;  %p443_p5 = pneg %p442_p7  ;;  %p448_p9 = scmp.lt.s32.totalorder %s446_s23, %s440_s17 }
  0x5d   : > { %v204_v7 = vsel %vm200_vm0, %v324_v4, %v203_v6  ;;  %p449_p0 = por %p448_p9, %p447_p8 }
  0x5e   : > { %205 = vst [vmem:[%s195_s29] sm:$0xff] %v204_v7 }
  0x5f   : > { %p450_p1 = pnand %p449_p0, %p443_p5 }
  0x61   : > { %453 = shalt.err (!%p450_p1)
}
  0x62   : > { %s454_s25 = scalar_lea.hbm %s697_s20, 128  ;;  %s458_s5 = scalar_lea.hbm %s741_s2, 256 }
  0x63   : > { %p455_p11 = scmp.ne.s32.totalorder %s697_s20, %s454_s25  ;;  %p459_p4 = scmp.lt.u32.totalorder %s697_s20, %s741_s2 }
  0x64   : > { %p460_p10 = scmp.lt.u32.totalorder %s458_s5, %s454_s25  ;;  %p462_p6 = scmp.lt.u32.totalorder %s454_s25, %s697_s20 }
  0x65   : > { %p456_p12 = pnand %p455_p11, %p754_p13 }
  0x66   : > { %p461_p3 = por %p460_p10, %p459_p4 }
  0x67   : > { %p457_p2 = pneg %p456_p12 }
  0x68   : > { %p463_p7 = por %p462_p6, %p461_p3 }
  0x6a   : > { %p464_p5 = pnand %p463_p7, %p457_p2 }
  0x6c   : > { %467 = shalt.err (!%p464_p5)
}
  0x6d   : > { %333 = dma.vmem_to_hbm [thread:$0]  (%p754_p13), %s692_s14, 128, %s697_s20, %s207_s24  }
  0x6e PF: > { %s232_s30 = sand.u32 1, %s498_s9   ;;  %p755_p8 = scmp.ne.s32.totalorder %s747_s22, 0 }
  0x6f   : > { %p756_p9 = scmp.ge.s32.totalorder %s510_s12, 2  ;;  %s233_s3 = scalar_lea.sflag [#allocation4], %s232_s30 }
  0x71   : > { %p343_p0 = pnand %p756_p9, %p755_p8 }
  0x73   : > { %493 = dma.done.wait (!%p343_p0), %s233_s3, 128  }
  0x74   : > { %495 = vsyncadd (!%p343_p0), %s233_s3, 4294967168  ;;  %p18_p1 = scmp.ge.s32.totalorder %s555_s15, 4   ;;  %s757_s9 = smov %s502_s10 }
  0x75   : > { %s758_s10 = smov %s506_s11  ;;  %s759_s11 = smov %s567_s18 }
  0x76   : > { %s760_s12 = smov %s555_s15  ;;  %20 = sbr.rel (!%p18_p1) target bundleno = 7 (0x7), region = 86 }
  0x7d   :  { %238 = vsyncpa [#allocation3], 1 }
  0x7e   :  { %240 = vsyncpa [#allocation3 + $0x1], 1 }
  0x7f   :  { %241 = vsyncpa [#allocation6], 1 }
  0x80   :  { %243 = vsyncpa [#allocation6 + $0x1], 1 }
  0x81   :  { %244 = vsyncpa [#allocation4], 1 }
  0x82   :  { %246 = vsyncpa [#allocation4 + $0x1], 1 }

</bundles_post_ra>
